<compile_context>
chip_gen: v5e
topology: v5e:2x2
jax: 0.10.0
libtpu: 0.0.40
codegen_flags: <defaults>
</compile_context>

<pallas_src>
import functools
import math

import jax
import jax.numpy as jnp
from jax.experimental import pallas as pl
from jax.experimental.pallas import tpu as pltpu


def _spectral_loss_kernel(x_ref, y_ref, *out_refs, gamma, f_u, chunk, acc_rows,
                          tile_rows, last_tile_rows, num_tiles, compute_complex):
    """Processes one (tile_rows, W) row tile; writes (acc_rows, W) partial sums."""
    W = x_ref.shape[1]
    mag_ref = out_refs[0]
    cpx_ref = out_refs[1] if compute_complex else None
    hg = 0.5 * gamma

    # (re, im)-pair partner swizzle: lanes are re,im,re,im,...; partner = lane ^ 1.
    # Select mask built once per tile at chunk shape; direction-agnostic w.r.t.
    # pltpu.roll's shift convention (exactly one of roll(+1)/roll(W-1) holds the
    # partner at each lane; the rolled-iota test picks it).
    lane = jax.lax.broadcasted_iota(jnp.int32, (chunk, W), 1)
    take_a = pltpu.roll(lane, shift=1, axis=1) == jnp.bitwise_xor(lane, 1)

    def pair_sum(s):
        # s + s[partner]  ==  |.|^2 broadcast to both lanes of each pair.
        a = pltpu.roll(s, shift=1, axis=1)
        b = pltpu.roll(s, shift=W - 1, axis=1)
        return s + jnp.where(take_a, a, b)

    def fold(v):
        # (chunk, W) -> (acc_rows, W), sublane-tile-aligned adds.
        out = v[0:acc_rows, :]
        for g in range(1, chunk // acc_rows):
            out = out + v[g * acc_rows:(g + 1) * acc_rows, :]
        return out

    def chunk_terms(x, y):
        sx = pair_sum(x * x)
        sy = pair_sum(y * y)
        if gamma != 1.0:
            # Shared log per input (clamp at 1e-24 == |x| clamped at 1e-12).
            lx = jnp.log(jnp.maximum(sx, 1e-24))
            ly = jnp.log(jnp.maximum(sy, 1e-24))
            ia = jnp.exp(hg * lx)          # |x|^gamma
            ta = jnp.exp(hg * ly)          # |y|^gamma
        else:
            ia = jnp.sqrt(sx)
            ta = jnp.sqrt(sy)
        diff = ia - ta
        mag = diff * diff
        if f_u != 1.0:
            mag = mag * jnp.where(ia < ta, jnp.float32(f_u), jnp.float32(1.0))
        if not compute_complex:
            return mag, None
        if gamma != 1.0:
            # |x|^g * exp(i*angle(x)) == x * |x|^(g-1); interleaved lanes keep
            # re/im in the right positions automatically.
            d = x * jnp.exp((hg - 0.5) * lx) - y * jnp.exp((hg - 0.5) * ly)
        else:
            d = x - y
        return mag, d * d

    def load(off):
        x = x_ref[off:off + chunk, :].astype(jnp.float32)
        y = y_ref[off:off + chunk, :].astype(jnp.float32)
        return x, y

    def run(valid_rows):
        mag_acc = jnp.zeros((acc_rows, W), jnp.float32)
        cpx_acc = jnp.zeros((acc_rows, W), jnp.float32) if compute_complex else None
        n_full = valid_rows // chunk
        rem = valid_rows - n_full * chunk
        for c in range(n_full):                       # fully unrolled, unmasked
            x, y = load(c * chunk)
            mag, cpx = chunk_terms(x, y)
            mag_acc = mag_acc + fold(mag)
            if compute_complex:
                cpx_acc = cpx_acc + fold(cpx)
        if rem:                                       # single straddling chunk
            x, y = load(n_full * chunk)
            row = jax.lax.broadcasted_iota(jnp.int32, (chunk, W), 0)
            ok = row < rem                            # rem is a static constant
            x = jnp.where(ok, x, 0.0)
            y = jnp.where(ok, y, 0.0)
            mag, cpx = chunk_terms(x, y)              # masked rows contribute 0
            mag_acc = mag_acc + fold(mag)
            if compute_complex:
                cpx_acc = cpx_acc + fold(cpx)
        mag_ref[...] = mag_acc
        if compute_complex:
            cpx_ref[...] = cpx_acc

    if last_tile_rows == tile_rows:
        run(tile_rows)                                # every tile full, one path
    elif num_tiles == 1:
        run(last_tile_rows)                           # single partial tile
    else:
        @pl.when(pl.program_id(0) < num_tiles - 1)
        def _():
            run(tile_rows)                            # fast unmasked path

        @pl.when(pl.program_id(0) == num_tiles - 1)
        def _():
            run(last_tile_rows)                       # short masked tail


def spectral_loss(inp, tgt, *, gamma=0.3, factor_magnitude=1000.0,
                  factor_complex=1000.0, factor_under=1.0,
                  target_tile_bytes=1 << 20, max_chunks_per_tile=32,
                  min_grid_tiles=4):
    """inp, tgt: [B, 1, T, F, 2] float32 (or bf16).  Returns scalar f32 loss."""
    assert inp.shape == tgt.shape and inp.shape[-1] == 2
    F = inp.shape[-2]
    rows = math.prod(inp.shape[:-2])          # B * 1 * T
    n_bins = rows * F
    W = 2 * F                                 # interleaved re/im lanes
    # TODO(synk): if W is not a multiple of 128 (e.g. F=257), pad F at the STFT
    # producer for fully lane-dense vector ops; the kernel stays correct as-is.

    # Contiguous reshape: zero-copy; the kernel reads every HBM byte once.
    x2d = inp.reshape(rows, W)
    y2d = tgt.reshape(rows, W)

    def ceil_to(v, m):
        return -(-v // m) * m

    # Chunk: ~16 KiB (4 vregs) per working array, multiple of 8 sublanes.
    if rows >= 8:
        chunk = max(8, min(64, (4096 // max(W, 1)) // 8 * 8, (rows // 8) * 8))
    else:
        chunk = rows
    acc_rows = min(8, chunk)

    # Tile: as many chunks as hit the per-input byte target (bounded so the
    # unrolled in-kernel loop stays small), then re-capped so the 1-D parallel
    # grid exposes >= min_grid_tiles tiles (keeps both v7x cores busy).
    chunk_bytes = chunk * W * 4
    n_chunks = int(max(1, min(max_chunks_per_tile, target_tile_bytes // chunk_bytes)))
    tile_rows = chunk * n_chunks
    tile_rows = min(tile_rows, ceil_to(rows, chunk))
    if min_grid_tiles > 1:
        cap = max(chunk, ceil_to(-(-rows // min_grid_tiles), chunk))
        tile_rows = min(tile_rows, cap)
    num_tiles = -(-rows // tile_rows)
    last_tile_rows = rows - (num_tiles - 1) * tile_rows

    compute_complex = factor_complex > 0
    kernel = functools.partial(
        _spectral_loss_kernel,
        gamma=float(gamma), f_u=float(factor_under),
        chunk=chunk, acc_rows=acc_rows, tile_rows=tile_rows,
        last_tile_rows=last_tile_rows, num_tiles=num_tiles,
        compute_complex=compute_complex)

    n_out = 2 if compute_complex else 1
    part_shape = jax.ShapeDtypeStruct((num_tiles * acc_rows, W), jnp.float32)
    in_spec = pl.BlockSpec((tile_rows, W), lambda i: (i, 0))
    out_spec = pl.BlockSpec((acc_rows, W), lambda i: (i, 0))

    outs = pl.pallas_call(
        kernel,
        out_shape=(part_shape,) * n_out,
        grid=(num_tiles,),
        in_specs=[in_spec, in_spec],
        out_specs=(out_spec,) * n_out,
        compiler_params=pltpu.CompilerParams(
            dimension_semantics=("parallel",),        # independent tiles
            vmem_limit_bytes=32 * 1024 * 1024),
    )(x2d, y2d)

    # Tiny final reductions + normalization done by XLA in the wrapper.
    denom = jnp.float32(2 * n_bins)
    loss = (jnp.sum(outs[0]) / denom) * factor_magnitude   # each bin counted twice
    if compute_complex:
        loss = loss + (jnp.sum(outs[1]) / denom) * factor_complex
    return loss


def spectral_loss_ref(inp, tgt, gamma=0.3, f_m=1000.0, f_c=1000.0, f_u=1.0):
    """Pure-JAX reference mirroring the PyTorch forward."""
    ir, ii = inp[..., 0], inp[..., 1]
    tr, ti = tgt[..., 0], tgt[..., 1]
    ia = jnp.sqrt(ir * ir + ii * ii)
    ta = jnp.sqrt(tr * tr + ti * ti)
    if gamma != 1:
        ia_g = jnp.maximum(ia, 1e-12) ** gamma
        ta_g = jnp.maximum(ta, 1e-12) ** gamma
    else:
        ia_g, ta_g = ia, ta
    tmp = (ia_g - ta_g) ** 2
    if f_u != 1:
        tmp = tmp * jnp.where(ia_g < ta_g, f_u, 1.0)
    loss = jnp.mean(tmp) * f_m
    if f_c > 0:
        if gamma != 1:
            ang_i = jnp.arctan2(ii, ir)
            ang_t = jnp.arctan2(ti, tr)
            nir, nii = ia_g * jnp.cos(ang_i), ia_g * jnp.sin(ang_i)
            ntr, nti = ta_g * jnp.cos(ang_t), ta_g * jnp.sin(ang_t)
        else:
            nir, nii, ntr, nti = ir, ii, tr, ti
        loss_c = jnp.mean((nir - ntr) ** 2 + (nii - nti) ** 2) / 2.0 * f_c
        loss = loss + loss_c
    return loss


if __name__ == "__main__":
    key = jax.random.PRNGKey(0)
    k1, k2, k3, k4 = jax.random.split(key, 4)

    # Case 1: lane-dense, evenly divisible shapes, default hyper-parameters.
    B, T, F = 2, 8, 64
    inp1 = jax.random.normal(k1, (B, 1, T, F, 2), dtype=jnp.float32)
    tgt1 = jax.random.normal(k2, (B, 1, T, F, 2), dtype=jnp.float32)
    out1 = jax.block_until_ready(spectral_loss(inp1, tgt1))
    ref1 = spectral_loss_ref(inp1, tgt1)
    assert jnp.allclose(out1, ref1, rtol=5e-3, atol=1e-3), (float(out1), float(ref1))

    # Case 2: row count not divisible by the tile (ragged tail, masked chunk in
    # the last grid step only), with under-estimation weighting enabled.
    inp2 = jax.random.normal(k3, (1, 1, 13, 128, 2), dtype=jnp.float32)
    tgt2 = jax.random.normal(k4, (1, 1, 13, 128, 2), dtype=jnp.float32)
    out2 = jax.block_until_ready(spectral_loss(inp2, tgt2, factor_under=4.0))
    ref2 = spectral_loss_ref(inp2, tgt2, f_u=4.0)
    assert jnp.allclose(out2, ref2, rtol=5e-3, atol=1e-3), (float(out2), float(ref2))

    # Case 3: gamma == 1 path (no magnitude compression).
    out3 = jax.block_until_ready(spectral_loss(inp1, tgt1, gamma=1.0))
    ref3 = spectral_loss_ref(inp1, tgt1, gamma=1.0)
    assert jnp.allclose(out3, ref3, rtol=5e-3, atol=1e-3), (float(out3), float(ref3))

    # Case 4: factor_complex <= 0 -> magnitude-only path, single output.
    out4 = jax.block_until_ready(spectral_loss(inp1, tgt1, factor_complex=0.0))
    ref4 = spectral_loss_ref(inp1, tgt1, f_c=0.0)
    assert jnp.allclose(out4, ref4, rtol=5e-3, atol=1e-3), (float(out4), float(ref4))

    print("KERNEL_OK")
</pallas_src>

<mosaic_0001>
module attributes {stable_mosaic.version = 11 : i64} {
  func.func @_spectral_loss_kernel(%arg0: i32, %arg1: memref<16x128xf32, #tpu.memory_space<vmem>>, %arg2: memref<16x128xf32, #tpu.memory_space<vmem>>, %arg3: memref<8x128xf32, #tpu.memory_space<vmem>>, %arg4: memref<8x128xf32, #tpu.memory_space<vmem>>) attributes {dimension_semantics = [#tpu.dimension_semantics<parallel>], iteration_bounds = array<i64: 1>, scalar_prefetch = 0 : i64, scratch_operands = 0 : i64, tpu.core_type = #tpu.core_type<tc>, window_params = [{transform_indices = @transform_0, window_bounds = array<i64: 16, 128>}, {transform_indices = @transform_1, window_bounds = array<i64: 16, 128>}, {transform_indices = @transform_2, window_bounds = array<i64: 8, 128>}, {transform_indices = @transform_3, window_bounds = array<i64: 8, 128>}]} {
    %0 = tpu.iota {dimensions = array<i32: 1>} : vector<16x128xi32>
    %c1_i32 = arith.constant 1 : i32
    %1 = tpu.dynamic_rotate %0 by %c1_i32 dim 1 : vector<16x128xi32>, i32 -> vector<16x128xi32>
    %c1_i32_0 = arith.constant 1 : i32
    %2 = vector.broadcast %c1_i32_0 : i32 to vector<16x128xi32>
    %3 = arith.xori %0, %2 : vector<16x128xi32>
    %4 = arith.cmpi eq, %1, %3 : vector<16x128xi32>
    %cst = arith.constant 0.000000e+00 : f32
    %5 = vector.broadcast %cst : f32 to vector<8x128xf32>
    %cst_1 = arith.constant 0.000000e+00 : f32
    %6 = vector.broadcast %cst_1 : f32 to vector<8x128xf32>
    %c0 = arith.constant 0 : index
    %c0_2 = arith.constant 0 : index
    %7 = vector.load %arg1[%c0, %c0_2] : memref<16x128xf32, #tpu.memory_space<vmem>>, vector<16x128xf32>
    %c0_3 = arith.constant 0 : index
    %c0_4 = arith.constant 0 : index
    %8 = vector.load %arg2[%c0_3, %c0_4] : memref<16x128xf32, #tpu.memory_space<vmem>>, vector<16x128xf32>
    %9 = arith.mulf %7, %7 : vector<16x128xf32>
    %c1_i32_5 = arith.constant 1 : i32
    %10 = tpu.dynamic_rotate %9 by %c1_i32_5 dim 1 : vector<16x128xf32>, i32 -> vector<16x128xf32>
    %c127_i32 = arith.constant 127 : i32
    %11 = tpu.dynamic_rotate %9 by %c127_i32 dim 1 : vector<16x128xf32>, i32 -> vector<16x128xf32>
    %12 = arith.select %4, %10, %11 : vector<16x128xi1>, vector<16x128xf32>
    %13 = arith.addf %9, %12 : vector<16x128xf32>
    %14 = arith.mulf %8, %8 : vector<16x128xf32>
    %c1_i32_6 = arith.constant 1 : i32
    %15 = tpu.dynamic_rotate %14 by %c1_i32_6 dim 1 : vector<16x128xf32>, i32 -> vector<16x128xf32>
    %c127_i32_7 = arith.constant 127 : i32
    %16 = tpu.dynamic_rotate %14 by %c127_i32_7 dim 1 : vector<16x128xf32>, i32 -> vector<16x128xf32>
    %17 = arith.select %4, %15, %16 : vector<16x128xi1>, vector<16x128xf32>
    %18 = arith.addf %14, %17 : vector<16x128xf32>
    %cst_8 = arith.constant 1.000000e-24 : f32
    %19 = vector.broadcast %cst_8 : f32 to vector<16x128xf32>
    %20 = arith.maximumf %13, %19 : vector<16x128xf32>
    %21 = math.log %20 : vector<16x128xf32>
    %cst_9 = arith.constant 1.000000e-24 : f32
    %22 = vector.broadcast %cst_9 : f32 to vector<16x128xf32>
    %23 = arith.maximumf %18, %22 : vector<16x128xf32>
    %24 = math.log %23 : vector<16x128xf32>
    %cst_10 = arith.constant 1.500000e-01 : f32
    %25 = vector.broadcast %cst_10 : f32 to vector<16x128xf32>
    %26 = arith.mulf %25, %21 : vector<16x128xf32>
    %27 = math.exp %26 : vector<16x128xf32>
    %cst_11 = arith.constant 1.500000e-01 : f32
    %28 = vector.broadcast %cst_11 : f32 to vector<16x128xf32>
    %29 = arith.mulf %28, %24 : vector<16x128xf32>
    %30 = math.exp %29 : vector<16x128xf32>
    %31 = arith.subf %27, %30 : vector<16x128xf32>
    %32 = arith.mulf %31, %31 : vector<16x128xf32>
    %cst_12 = arith.constant -3.500000e-01 : f32
    %33 = vector.broadcast %cst_12 : f32 to vector<16x128xf32>
    %34 = arith.mulf %33, %21 : vector<16x128xf32>
    %35 = math.exp %34 : vector<16x128xf32>
    %36 = arith.mulf %7, %35 : vector<16x128xf32>
    %cst_13 = arith.constant -3.500000e-01 : f32
    %37 = vector.broadcast %cst_13 : f32 to vector<16x128xf32>
    %38 = arith.mulf %37, %24 : vector<16x128xf32>
    %39 = math.exp %38 : vector<16x128xf32>
    %40 = arith.mulf %8, %39 : vector<16x128xf32>
    %41 = arith.subf %36, %40 : vector<16x128xf32>
    %42 = arith.mulf %41, %41 : vector<16x128xf32>
    %43 = vector.extract_strided_slice %32 {offsets = [0, 0], sizes = [8, 128], strides = [1, 1]} : vector<16x128xf32> to vector<8x128xf32>
    %44 = vector.extract_strided_slice %32 {offsets = [8, 0], sizes = [8, 128], strides = [1, 1]} : vector<16x128xf32> to vector<8x128xf32>
    %45 = arith.addf %43, %44 : vector<8x128xf32>
    %46 = arith.addf %5, %45 : vector<8x128xf32>
    %47 = vector.extract_strided_slice %42 {offsets = [0, 0], sizes = [8, 128], strides = [1, 1]} : vector<16x128xf32> to vector<8x128xf32>
    %48 = vector.extract_strided_slice %42 {offsets = [8, 0], sizes = [8, 128], strides = [1, 1]} : vector<16x128xf32> to vector<8x128xf32>
    %49 = arith.addf %47, %48 : vector<8x128xf32>
    %50 = arith.addf %6, %49 : vector<8x128xf32>
    %c0_14 = arith.constant 0 : index
    %c0_15 = arith.constant 0 : index
    %51 = vector.load %arg3[%c0_14, %c0_15] : memref<8x128xf32, #tpu.memory_space<vmem>>, vector<8x128xf32>
    tpu.vector_store %arg3[%c0_14, %c0_15], %46 {strides = array<i32>} : memref<8x128xf32, #tpu.memory_space<vmem>>, vector<8x128xf32>,
    %c0_16 = arith.constant 0 : index
    %c0_17 = arith.constant 0 : index
    %52 = vector.load %arg4[%c0_16, %c0_17] : memref<8x128xf32, #tpu.memory_space<vmem>>, vector<8x128xf32>
    tpu.vector_store %arg4[%c0_16, %c0_17], %50 {strides = array<i32>} : memref<8x128xf32, #tpu.memory_space<vmem>>, vector<8x128xf32>,
    return
  }
  func.func @transform_0(%arg0: i32) -> (i32, i32) {
    %c0_i32 = arith.constant 0 : i32
    %c0_i32_0 = arith.constant 0 : i32
    return %arg0, %c0_i32 : i32, i32
  }
  func.func @transform_1(%arg0: i32) -> (i32, i32) {
    %c0_i32 = arith.constant 0 : i32
    %c0_i32_0 = arith.constant 0 : i32
    return %arg0, %c0_i32 : i32, i32
  }
  func.func @transform_2(%arg0: i32) -> (i32, i32) {
    %c0_i32 = arith.constant 0 : i32
    %c0_i32_0 = arith.constant 0 : i32
    return %arg0, %c0_i32 : i32, i32
  }
  func.func @transform_3(%arg0: i32) -> (i32, i32) {
    %c0_i32 = arith.constant 0 : i32
    %c0_i32_0 = arith.constant 0 : i32
    return %arg0, %c0_i32 : i32, i32
  }
}

</mosaic_0001>

<bundles_post_ra>
// kernel: tpu_custom_call.1
= control target key start
LH: loop header
LB: loop body
LE: loop exit
PB: predicated region body
PF: predicated region fallthrough
CT: control target
= control target key end

     0   :  { %9 = vsyncpa [#allocation3], 0  ;;  %s381_s0 = inlined_call_operand.hbm [shape: f32[16,128], index: 0, kind: input, shape index: {}]   ;;  %s382_s1 = inlined_call_operand.hbm [shape: f32[16,128], index: 1, kind: input, shape index: {}]   ;;  %s383_s2 = inlined_call_operand.hbm [shape: f32[8,128], index: 2, kind: output, shape index: {0}]   ;;  %s384_s3 = inlined_call_operand.hbm [shape: f32[8,128], index: 3, kind: output, shape index: {1}]  }
   0x1   :  { %10 = vsyncpa [#allocation6], 0 }
   0x2   :  { %11 = vsyncpa [#allocation4], 0 }
   0x3   :  { %12 = vsyncpa [#allocation9], 0  ;;  %s17_s14 = sshll.u32 %s381_s0, 4  ;;  %s309_s15 = smov [#allocation2]   ;;  %s18_s14 = int_to_ptr.hbm [resolvable:$true] %s17_s14 }
   0x4   :  { %s19_s16 = sshll.u32 %s309_s15, 4  ;;  %s30_s19 = sshll.u32 %s382_s1, 4  ;;  %s20_s16 = int_to_ptr.vmem [resolvable:$true] %s19_s16  ;;  %s31_s19 = int_to_ptr.hbm [resolvable:$true] %s30_s19 }
   0x5   :  { %s310_s20 = smov 128   ;;  %s311_s21 = smov 8  }
   0x6   :  { %25 = dma.hbm_to_vmem [thread:$0]  %s18_s14, 256, %s20_s16, [#allocation3], %s310_s20, %s310_s20, %s311_s21  }
   0x7   :  { %s312_s22 = smov [#allocation5]  }
   0x8   :  { %s32_s23 = sshll.u32 %s312_s22, 4  ;;  %s33_s23 = int_to_ptr.vmem [resolvable:$true] %s32_s23 }
   0x9   :  { %38 = dma.hbm_to_vmem [thread:$0]  %s31_s19, 256, %s33_s23, [#allocation6], %s310_s20, %s310_s20, %s311_s21  }
   0xa   :  { %301 = dma.done.wait [#allocation3], 256  }
   0xb   :  { %302 = vsyncadd [#allocation3], 4294967040 }
   0xc   :  { %303 = dma.done.wait [#allocation6], 256  }
   0xd   :  { %304 = vsyncadd [#allocation6], 4294967040  ;;  %v47_v0 = vlaneseq  ;;  %s313_s0 = smov 1   ;;  %v343_v2 = vld [vmem:[#allocation2 + $0x8] sm:$0xff]  ;;  %v345_v3 = vld [vmem:[#allocation2] sm:$0xff]  ;;  %s314_s1 = smov 127  }
   0xe   :  { %v58_v4 = vmul.f32 %v343_v2, %v343_v2  ;;  %v57_v5 = vmul.f32 %v345_v3, %v345_v3  ;;  %v351_v6 = vld [vmem:[#allocation5 + $0x8] sm:$0xff]  ;;  %v353_v7 = vld [vmem:[#allocation5] sm:$0xff]  ;;  %s315_s24 = smov [#allocation7]   ;;  %s146_s28 = sshll.u32 %s383_s2, 4  ;;  %s147_s28 = int_to_ptr.hbm [resolvable:$true] %s146_s28 }
   0xf   :  { %v48_v1 = vand.u32 127, %v47_v0  ;;  %v72_v8 = vmul.f32 %v351_v6, %v351_v6  ;;  %v71_v9 = vmul.f32 %v353_v7, %v353_v7  ;;  %s144_s25 = sshll.u32 %s315_s24, 4  ;;  %s316_s29 = smov [#allocation8]   ;;  %s145_s25 = int_to_ptr.vmem [resolvable:$true] %s144_s25 }
  0x10   :  { %61 = vrot.lane.b32.xlu1 %v58_v4, %s313_s0  ;;  %65 = vrot.lane.b32.xlu2 %v58_v4, %s314_s1  ;;  %s155_s30 = sshll.u32 %s316_s29, 4  ;;  %s157_s6 = sshll.u32 %s384_s3, 4  ;;  %s156_s30 = int_to_ptr.vmem [resolvable:$true] %s155_s30  ;;  %s158_s6 = int_to_ptr.hbm [resolvable:$true] %s157_s6 }
  0x11   :  { %49 = vrot.lane.b32.xlu0 %v48_v1, %s313_s0  ;;  %v51_v12 = vxor.u32 1, %v48_v1 }
  0x18   :  { %63 = vrot.lane.b32.xlu1 %v57_v5, %s314_s1  ;;  %73 = vrot.lane.b32.xlu2 %v71_v9, %s313_s0 }
  0x19   :  { %59 = vrot.lane.b32.xlu0 %v57_v5, %s313_s0 }
  0x20   :  { %77 = vrot.lane.b32.xlu1 %v71_v9, %s314_s1  ;;  %79 = vrot.lane.b32.xlu2 %v72_v8, %s314_s1 }
  0x21   :  { %75 = vrot.lane.b32.xlu0 %v72_v8, %s313_s0 }
  0x6a   :  { %v66_v10 = vpop.permute.xlu2 %65 }
  0x72   :  { %v74_v14 = vpop.permute.xlu2 %73 }
  0x7a   :  { %v80_v21 = vpop.permute.xlu2 %79 }
  0x82   :  { %v62_v15 = vpop.permute.xlu1 %61 }
  0x83   :  { %v50_v11 = vpop.permute.xlu0 %49 }
  0x84   :  { %vm359_vm0 = vcmp.eq.s32.totalorder %v50_v11, %v51_v12 }
  0x85   :  { %v68_v16 = vsel %vm359_vm0, %v62_v15, %v66_v10 }
  0x86   :  { %v70_v17 = vadd.f32 %v68_v16, %v58_v4 }
  0x88   :  { %v86_v19 = vmax.f32 %v70_v17, 1e-24 }
  0x8a   :  { %181 = vlog2.f32 %v86_v19  ;;  %v64_v20 = vpop.permute.xlu1 %63 }
  0x8b   :  { %v60_v18 = vpop.permute.xlu0 %59 }
  0x8c   :  { %v67_v22 = vsel %vm359_vm0, %v60_v18, %v64_v20 }
  0x8d   :  { %v69_v23 = vadd.f32 %v67_v22, %v57_v5 }
  0x8f   :  { %v85_v26 = vmax.f32 %v69_v23, 1e-24 }
  0x90   :  { %v182_v28 = vpop.eup %181 }
  0x91   :  { %183 = vlog2.f32 %v85_v26  ;;  %v90_v31 = vmul.f32 0.6931472, %v182_v28 }
  0x92   :  { %v78_v30 = vpop.permute.xlu1 %77 }
  0x93   :  { %v76_v24 = vpop.permute.xlu0 %75  ;;  %v81_v32 = vsel %vm359_vm0, %v74_v14, %v78_v30  ;;  %v98_v36 = vmul.f32 0.15, %v90_v31  ;;  %v114_v40 = vmul.f32 -0.35, %v90_v31 }
  0x94   :  { %v82_v25 = vsel %vm359_vm0, %v76_v24, %v80_v21  ;;  %v83_v33 = vadd.f32 %v81_v32, %v71_v9 }
  0x95   :  { %v84_v27 = vadd.f32 %v82_v25, %v72_v8  ;;  %v101_v41 = vmul.f32 1.442695, %v98_v36  ;;  %v117_v48 = vmul.f32 1.442695, %v114_v40 }
  0x96   :  { %v91_v35 = vmax.f32 %v83_v33, 1e-24 }
  0x97   :  { %v92_v29 = vmax.f32 %v84_v27, 1e-24  ;;  %v184_v34 = vpop.eup %183 }
  0x98   :  { %v88_v37 = vmul.f32 0.6931472, %v184_v34 }
  0x99   :  { %185 = vlog2.f32 %v92_v29 }
  0x9a   :  { %187 = vlog2.f32 %v91_v35  ;;  %v97_v42 = vmul.f32 0.15, %v88_v37  ;;  %v113_v44 = vmul.f32 -0.35, %v88_v37 }
  0x9b   :  { %189 = vpow2.f32 %v101_v41 }
  0x9c   :  { %v99_v50 = vmul.f32 1.442695, %v97_v42  ;;  %v115_v52 = vmul.f32 1.442695, %v113_v44 }
  0x9f   :  { %v186_v38 = vpop.eup %185 }
  0xa0   :  { %v96_v39 = vmul.f32 0.6931472, %v186_v38  ;;  %v188_v47 = vpop.eup %187 }
  0xa1   :  { %v94_v51 = vmul.f32 0.6931472, %v188_v47  ;;  %v190_v57 = vpop.eup %189 }
  0xa2   :  { %v104_v43 = vmul.f32 0.15, %v96_v39  ;;  %v122_v45 = vmul.f32 -0.35, %v96_v39 }
  0xa3   :  { %v103_v53 = vmul.f32 0.15, %v94_v51  ;;  %v121_v54 = vmul.f32 -0.35, %v94_v51 }
  0xa4   :  { %v107_v46 = vmul.f32 1.442695, %v104_v43  ;;  %v125_v49 = vmul.f32 1.442695, %v122_v45 }
  0xa5   :  { %v105_v55 = vmul.f32 1.442695, %v103_v53  ;;  %v123_v56 = vmul.f32 1.442695, %v121_v54 }
  0xa6   :  { %191 = vpow2.f32 %v125_v49 }
  0xa7   :  { %193 = vpow2.f32 %v107_v46 }
  0xa8   :  { %195 = vpow2.f32 %v117_v48 }
  0xa9   :  { %197 = vpow2.f32 %v99_v50 }
  0xaa   :  { %199 = vpow2.f32 %v115_v52 }
  0xab   :  { %201 = vpow2.f32 %v105_v55 }
  0xac   :  { %v192_v58 = vpop.eup %191  ;;  %203 = vpow2.f32 %v123_v56 }
  0xad   :  { %v194_v59 = vpop.eup %193  ;;  %v128_v62 = vmul.f32 %v192_v58, %v351_v6 }
  0xae   :  { %v196_v60 = vpop.eup %195  ;;  %v110_v0 = vsub.f32 %v190_v57, %v194_v59 }
  0xaf   :  { %v198_v61 = vpop.eup %197  ;;  %v120_v4 = vmul.f32 %v196_v60, %v343_v2 }
  0xb0   :  { %v200_v63 = vpop.eup %199  ;;  %v112_v6 = vmul.f32 %v110_v0, %v110_v0 }
  0xb1   :  { %v202_v1 = vpop.eup %201  ;;  %v119_v9 = vmul.f32 %v200_v63, %v345_v3  ;;  %v130_v11 = vsub.f32 %v120_v4, %v128_v62 }
  0xb2   :  { %v204_v5 = vpop.eup %203  ;;  %v109_v8 = vsub.f32 %v198_v61, %v202_v1 }
  0xb3   :  { %v127_v10 = vmul.f32 %v204_v5, %v353_v7  ;;  %v132_v15 = vmul.f32 %v130_v11, %v130_v11 }
  0xb4   :  { %v111_v12 = vmul.f32 %v109_v8, %v109_v8 }
  0xb5   :  { %v129_v13 = vsub.f32 %v119_v9, %v127_v10 }
  0xb6   :  { %v133_v2 = vadd.f32 %v112_v6, %v111_v12 }
  0xb7   :  { %v131_v14 = vmul.f32 %v129_v13, %v129_v13 }
  0xb8   :  { %137 = vst [vmem:[#allocation7] sm:$0xff] %v133_v2 }
  0xb9   :  { %149 = dma.vmem_to_hbm [thread:$0]  %s145_s25, 128, %s147_s28, [#allocation4]   ;;  %v135_v3 = vadd.f32 %v132_v15, %v131_v14 }
  0xbb   :  { %138 = vst [vmem:[#allocation8] sm:$0xff] %v135_v3 }
  0xbc   :  { %160 = dma.vmem_to_hbm [thread:$0]  %s156_s30, 128, %s158_s6, [#allocation9]  }
  0xbd   :  { %305 = dma.done.wait [#allocation4], 128  }
  0xbe   :  { %306 = vsyncadd [#allocation4], 4294967168 }
  0xbf   :  { %307 = dma.done.wait [#allocation9], 128  }
  0xc0   :  { %308 = vsyncadd [#allocation9], 4294967168 }
  0xc1   :  { %169 = vsyncpa [#allocation3], 1 }
  0xc2   :  { %170 = vsyncpa [#allocation6], 1 }
  0xc3   :  { %171 = vsyncpa [#allocation4], 1 }
  0xc4   :  { %172 = vsyncpa [#allocation9], 1 }

</bundles_post_ra>
